<compile_context>
chip_gen: v6e
topology: v6e:2x2x1
jax: 0.10.0
libtpu: 0.0.40
codegen_flags: <defaults>
</compile_context>

<pallas_src>
import functools
import math

import jax
import jax.numpy as jnp
from jax.experimental import pallas as pl
from jax.experimental.pallas import tpu as pltpu

_LANES = 128


def _cdiv(a, b):
    return -(-a // b)


def _round_up(x, m):
    return ((x + m - 1) // m) * m


@functools.lru_cache(maxsize=None)
def _device_defaults():
    """Per-TPU-generation tuning: block bytes, native-16bit reduce, 2-TC split."""
    kind = ""
    try:
        kind = jax.devices()[0].device_kind.lower()
    except Exception:
        pass
    if "v7" in kind or "tpu7" in kind:
        # v7x: 3.2 TB/s HBM -> bigger blocks; only 64 MiB VMEM; 2 TCs/chip.
        return {"block_bytes": 16 << 20, "native16": True, "two_core": True}
    if "v6" in kind:
        # v6e: native bf16 VPU; 32 MiB default scoped VMEM is plenty.
        return {"block_bytes": 8 << 20, "native16": True, "two_core": False}
    if "v5p" in kind:
        return {"block_bytes": 6 << 20, "native16": False, "two_core": True}
    # v5e / v4 / unknown: conservative blocks, f32 reduce path.
    return {"block_bytes": 4 << 20, "native16": False, "two_core": False}


def _choose_tiling(rows_k, itemsize, block_bytes, two_core):
    """Pick (block_rows, n_blocks, n_parallel, blocks_per_core) for a (rows_k,128) slab."""
    target_rows = max(32, (block_bytes // (_LANES * itemsize) // 32) * 32)
    if two_core and rows_k >= 64:
        # Ensure >= 2 blocks so the 'parallel' axis can shard across both TCs
        # even for tensors that would otherwise fit a single block.
        target_rows = min(target_rows, _round_up(_cdiv(rows_k, 2), 32))
    if rows_k <= target_rows:
        return rows_k, 1, 1, 1              # single full-extent block
    br = target_rows
    nb = _cdiv(rows_k, br)
    n_par = 2 if nb >= 2 else 1
    if n_par == 2 and nb % 2 == 1:
        # Re-balance to an even block count when possible so both cores do the
        # same number of blocks (avoids one redundant clamped block fetch).
        br2 = max(32, _round_up(_cdiv(rows_k, nb + 1), 32))
        nb2 = _cdiv(rows_k, br2)
        if nb2 % 2 == 0:
            br, nb = br2, nb2
    bpc = _cdiv(nb, n_par)
    return br, nb, n_par, bpc


def _build_minmax_call(rows_k, in_dtype, block_bytes, native16, two_core):
    """pallas_call computing per-core min / max / has-NaN for a (rows_k, 128) slab."""
    in_dtype = jnp.dtype(in_dtype)
    itemsize = in_dtype.itemsize
    br, nb, n_par, bpc = _choose_tiling(rows_k, itemsize, block_bytes, two_core)
    tail_rows = rows_k - (nb - 1) * br       # valid rows in the final logical block
    has_tail = tail_rows != br               # final block is partial
    has_dup = n_par * bpc != nb              # uneven split -> clamped duplicate block(s)
    # Native 16-bit reduction only where the VPU has a bf16 path (v6e/v7x).
    use_native = bool(native16) and in_dtype == jnp.bfloat16

    def kernel(x_ref, o_ref):
        c = pl.program_id(0)
        k = pl.program_id(1)
        lin = c * bpc + k                    # unclamped logical block index

        @pl.when(k == 0)
        def _init():
            o_ref[...] = jnp.zeros((8, _LANES), jnp.float32)
            o_ref[0:1, :] = jnp.full((1, _LANES), jnp.inf, jnp.float32)
            o_ref[1:2, :] = jnp.full((1, _LANES), -jnp.inf, jnp.float32)

        def load_block():
            x = x_ref[...]
            return x if use_native else x.astype(jnp.float32)

        def accumulate(x_min, x_max, nan_bool):
            # Lane-parallel (1,128) partials in the compute dtype; only the
            # partial rows are cast to f32 before accumulating.
            cdt = x_min.dtype
            o_ref[0:1, :] = jnp.minimum(
                o_ref[0:1, :],
                jnp.min(x_min, axis=0, keepdims=True).astype(jnp.float32))
            o_ref[1:2, :] = jnp.maximum(
                o_ref[1:2, :],
                jnp.max(x_max, axis=0, keepdims=True).astype(jnp.float32))
            o_ref[2:3, :] = jnp.maximum(
                o_ref[2:3, :],
                jnp.max(nan_bool.astype(cdt), axis=0,
                        keepdims=True).astype(jnp.float32))

        def plain():
            x = load_block()
            accumulate(x, x, jnp.isnan(x))

        if has_tail:
            # Only the FINAL logical block pays the row-mask cost; every full
            # block stays on the cheap VPU path.
            @pl.when(lin == nb - 1)
            def _masked():
                x = load_block()
                ridx = jax.lax.broadcasted_iota(jnp.int32, (br, _LANES), 0)
                valid = ridx < tail_rows     # static tail size
                accumulate(jnp.where(valid, x, jnp.inf),
                           jnp.where(valid, x, -jnp.inf),
                           jnp.isnan(x) & valid)

            @pl.when(lin < nb - 1)
            def _full():
                plain()
            # lin >= nb (clamped duplicates) fall through and do nothing.
        elif has_dup:
            @pl.when(lin < nb)
            def _full():
                plain()
        else:
            plain()

        # Final cross-lane reduce on the (otherwise idle) XLU at the last step
        # of this core's slice; the wrapper then only reads 3 scalars per core.
        @pl.when(k == bpc - 1)
        def _fin():
            o_ref[3:4, :] = jnp.broadcast_to(
                jnp.min(o_ref[0:1, :], axis=1, keepdims=True), (1, _LANES))
            o_ref[4:5, :] = jnp.broadcast_to(
                jnp.max(o_ref[1:2, :], axis=1, keepdims=True), (1, _LANES))
            o_ref[5:6, :] = jnp.broadcast_to(
                jnp.max(o_ref[2:3, :], axis=1, keepdims=True), (1, _LANES))

    if has_dup:
        in_index = lambda c, k: (jnp.minimum(c * bpc + k, nb - 1), 0)
    else:
        in_index = lambda c, k: (c * bpc + k, 0)

    buf_bytes = br * _LANES * itemsize
    # Double-buffered input + tiny output; stays well under 64 MiB (v7x physical).
    vmem_limit = int(min(max(2 * buf_bytes + (4 << 20), 32 << 20), 48 << 20))

    return pl.pallas_call(
        kernel,
        out_shape=jax.ShapeDtypeStruct((n_par, 8, _LANES), jnp.float32),
        grid=(n_par, bpc),
        in_specs=[pl.BlockSpec((br, _LANES), in_index)],
        out_specs=pl.BlockSpec((None, 8, _LANES), lambda c, k: (c, 0, 0)),
        compiler_params=pltpu.CompilerParams(
            dimension_semantics=("parallel", "arbitrary"),
            vmem_limit_bytes=vmem_limit),
    )


def _make_tensor_stats(shape, dtype_name, block_bytes, native16, two_core):
    """Returns a traceable fn: x -> (has_nan, min, max) for one tensor shape/dtype."""
    dtype = jnp.dtype(dtype_name)
    n = int(math.prod(shape))

    if not jnp.issubdtype(dtype, jnp.floating):
        # Integer / bool tensors can never contain NaN.
        def stats_nonfloat(x):
            return (jnp.zeros((), jnp.bool_), jnp.min(x), jnp.max(x))
        return stats_nonfloat

    rows_k = (n // _LANES // 8) * 8          # rows handled by the Pallas kernel
    bulk = rows_k * _LANES
    call = (_build_minmax_call(rows_k, dtype, block_bytes, native16, two_core)
            if rows_k > 0 else None)

    def stats(x):
        # TODO(synk): a non-default (transposed) input layout can force a relayout
        # copy at this reshape; outputs of standard JAX ops are row-major so it is free.
        flat = jnp.reshape(x, (n,))
        mins, maxs, nans = [], [], []
        if rows_k > 0:
            slab = jnp.reshape(flat[:bulk], (rows_k, _LANES))
            tiles = call(slab)                              # (n_par, 8, 128) f32
            mins.append(jnp.min(tiles[:, 3, 0]))            # in-kernel reduced scalars
            maxs.append(jnp.max(tiles[:, 4, 0]))
            nans.append(jnp.max(tiles[:, 5, 0]) > 0.5)
        if bulk < n:                                        # <1152-element tail: plain JAX
            tail = flat[bulk:].astype(jnp.float32)
            mins.append(jnp.min(tail))
            maxs.append(jnp.max(tail))
            nans.append(jnp.any(jnp.isnan(tail)))
        gmin = mins[0] if len(mins) == 1 else jnp.minimum(mins[0], mins[1])
        gmax = maxs[0] if len(maxs) == 1 else jnp.maximum(maxs[0], maxs[1])
        has_nan = nans[0] if len(nans) == 1 else (nans[0] | nans[1])
        has_nan = has_nan | jnp.isnan(gmin) | jnp.isnan(gmax)
        return (has_nan, gmin, gmax)

    return stats


@functools.lru_cache(maxsize=None)
def _get_batched_stats_fn(signature):
    """One jitted fn computing stats for ALL tensors of a forward() (one host sync)."""
    d = _device_defaults()
    fns = [_make_tensor_stats(shape, dtype_name, d["block_bytes"],
                              d["native16"], d["two_core"])
           for shape, dtype_name in signature]

    def batched(*arrays):
        return tuple(fn(a) for fn, a in zip(fns, arrays))

    return jax.jit(batched)


@functools.lru_cache(maxsize=None)
def _get_single_stats_fn(shape, dtype_name, block_bytes, native16, two_core):
    return jax.jit(_make_tensor_stats(shape, dtype_name, block_bytes,
                                      native16, two_core))


def _tensor_stats(arr, block_bytes=None):
    """(has_nan, min, max) for one tensor — used by the self-tests below."""
    arr = jnp.asarray(arr)
    d = _device_defaults()
    bb = int(block_bytes) if block_bytes is not None else d["block_bytes"]
    fn = _get_single_stats_fn(tuple(arr.shape), str(arr.dtype), bb,
                              d["native16"], d["two_core"])
    has_nan, amin, amax = jax.device_get(fn(arr))
    return bool(has_nan), float(amin), float(amax)


class CheckNan:
    """JAX/Pallas port of the PyTorch CheckNan module (identity pass-through + NaN check)."""

    def __init__(self, i: int):
        self.nth_module = i

    def __call__(self, *args):
        n = len(args)
        if n == 0:
            return args
        arrays = tuple(jnp.asarray(a) for a in args)
        sig = tuple((tuple(a.shape), str(a.dtype)) for a in arrays)
        # Single device->host sync for ALL tensors of this forward pass.
        stats = jax.device_get(_get_batched_stats_fn(sig)(*arrays))
        for i, (arr, (has_nan, amin, amax)) in enumerate(zip(arrays, stats), start=1):
            if bool(has_nan):
                raise ValueError(f"{self.nth_module}: Item {i}/{n} was NaN")
            print(f"{self.nth_module}: Item {i}/{n} was OK, "
                  f"shape={tuple(arr.shape)} min={amin} max={amax}")
        return arrays if n > 1 else arrays[0]

    forward = __call__


if __name__ == "__main__":
    key = jax.random.PRNGKey(0)
    k1, k2, k3 = jax.random.split(key, 3)

    # Small shapes consistent with an activation-checking module.
    x = jax.random.normal(k1, (2, 4, 16, 16), dtype=jnp.float32)                  # NCHW activation
    y = jax.random.normal(k2, (8, 512), dtype=jnp.float32).astype(jnp.bfloat16)   # (seq, hidden)

    model = CheckNan(3)
    out = model(x, y)
    out = jax.block_until_ready(out)

    # ---- silent correctness checks ------------------------------------------
    # 1) stats match plain-JAX references (f32 and native-bf16 paths).
    for arr in (x, y):
        has_nan, amin, amax = _tensor_stats(arr)
        ref = arr.astype(jnp.float32)
        assert not has_nan
        assert abs(amin - float(jnp.min(ref))) <= 1e-6
        assert abs(amax - float(jnp.max(ref))) <= 1e-6

    # 2) multi-block / tail-masked / duplicate-clamped / 2-way-parallel path
    #    (tiny block size to force it) plus a non-128-multiple JAX tail.
    z = jax.random.normal(k3, (512, 201), dtype=jnp.float32)
    has_nan, zmin, zmax = _tensor_stats(z, block_bytes=64 * 1024)
    assert not has_nan
    assert abs(zmin - float(jnp.min(z))) <= 1e-6
    assert abs(zmax - float(jnp.max(z))) <= 1e-6
    has_nan, _, _ = _tensor_stats(z.at[123, 45].set(jnp.nan), block_bytes=64 * 1024)   # NaN in bulk
    assert has_nan
    has_nan, _, _ = _tensor_stats(z.at[511, 200].set(jnp.nan), block_bytes=64 * 1024)  # NaN in tail
    assert has_nan

    # 3) the module raises on NaN input (matching the PyTorch forward).
    raised = False
    try:
        model(x.at[1, 2, 3, 4].set(jnp.nan))
    except ValueError:
        raised = True
    assert raised

    print("KERNEL_OK")
</pallas_src>

<mosaic_0001>
module attributes {stable_mosaic.version = 11 : i64} {
  func.func @kernel(%arg0: i32, %arg1: i32, %arg2: memref<16x128xf32, #tpu.memory_space<vmem>>, %arg3: memref<1x8x128xf32, #tpu.memory_space<vmem>>) attributes {dimension_semantics = [#tpu.dimension_semantics<parallel>, #tpu.dimension_semantics<arbitrary>], iteration_bounds = array<i64: 1, 1>, scalar_prefetch = 0 : i64, scratch_operands = 0 : i64, tpu.core_type = #tpu.core_type<tc>, window_params = [{transform_indices = @transform_0, window_bounds = array<i64: 16, 128>}, {transform_indices = @transform_1, window_bounds = array<i64: 1, 8, 128>}]} {
    %c0_i32 = arith.constant 0 : i32
    %0 = arith.cmpi eq, %arg1, %c0_i32 : i32
    %1 = arith.extui %0 : i1 to i32
    %c0_i32_0 = arith.constant 0 : i32
    %2 = arith.cmpi ne, %1, %c0_i32_0 : i32
    scf.if %2 {
      %cst_22 = arith.constant 0.000000e+00 : f32
      %34 = vector.broadcast %cst_22 : f32 to vector<8x128xf32>
      %c0_23 = arith.constant 0 : index
      %c0_24 = arith.constant 0 : index
      %c0_25 = arith.constant 0 : index
      %35 = vector.load %arg3[%c0_23, %c0_24, %c0_25] : memref<1x8x128xf32, #tpu.memory_space<vmem>>, vector<1x8x128xf32>
      %36 = vector.shape_cast %35 : vector<1x8x128xf32> to vector<8x128xf32>
      %37 = vector.shape_cast %34 : vector<8x128xf32> to vector<1x8x128xf32>
      tpu.vector_store %arg3[%c0_23, %c0_24, %c0_25], %37 {strides = array<i32>} : memref<1x8x128xf32, #tpu.memory_space<vmem>>, vector<1x8x128xf32>,
      %cst_26 = arith.constant 0x7F800000 : f32
      %38 = vector.broadcast %cst_26 : f32 to vector<1x128xf32>
      %c0_27 = arith.constant 0 : index
      %c0_28 = arith.constant 0 : index
      %c0_29 = arith.constant 0 : index
      %39 = vector.load %arg3[%c0_27, %c0_28, %c0_29] : memref<1x8x128xf32, #tpu.memory_space<vmem>>, vector<1x1x128xf32>
      %40 = vector.shape_cast %39 : vector<1x1x128xf32> to vector<1x128xf32>
      %41 = vector.shape_cast %38 : vector<1x128xf32> to vector<1x1x128xf32>
      tpu.vector_store %arg3[%c0_27, %c0_28, %c0_29], %41 {strides = array<i32>} : memref<1x8x128xf32, #tpu.memory_space<vmem>>, vector<1x1x128xf32>,
      %cst_30 = arith.constant 0xFF800000 : f32
      %42 = vector.broadcast %cst_30 : f32 to vector<1x128xf32>
      %c0_31 = arith.constant 0 : index
      %c1_32 = arith.constant 1 : index
      %c0_33 = arith.constant 0 : index
      %43 = vector.load %arg3[%c0_31, %c1_32, %c0_33] : memref<1x8x128xf32, #tpu.memory_space<vmem>>, vector<1x1x128xf32>
      %44 = vector.shape_cast %43 : vector<1x1x128xf32> to vector<1x128xf32>
      %45 = vector.shape_cast %42 : vector<1x128xf32> to vector<1x1x128xf32>
      tpu.vector_store %arg3[%c0_31, %c1_32, %c0_33], %45 {strides = array<i32>} : memref<1x8x128xf32, #tpu.memory_space<vmem>>, vector<1x1x128xf32>,
    } else {
    }
    %c0 = arith.constant 0 : index
    %c0_1 = arith.constant 0 : index
    %3 = vector.load %arg2[%c0, %c0_1] : memref<16x128xf32, #tpu.memory_space<vmem>>, vector<16x128xf32>
    %4 = arith.cmpf one, %3, %3 : vector<16x128xf32>
    %c0_2 = arith.constant 0 : index
    %c0_3 = arith.constant 0 : index
    %c0_4 = arith.constant 0 : index
    %5 = vector.load %arg3[%c0_2, %c0_3, %c0_4] : memref<1x8x128xf32, #tpu.memory_space<vmem>>, vector<1x1x128xf32>
    %6 = vector.shape_cast %5 : vector<1x1x128xf32> to vector<1x128xf32>
    %cst = arith.constant dense<0x7F800000> : vector<128xf32>
    %7 = vector.multi_reduction <minimumf>, %3, %cst [0] : vector<16x128xf32> to vector<128xf32>
    %8 = vector.shape_cast %7 : vector<128xf32> to vector<1x128xf32>
    %9 = arith.minimumf %6, %8 : vector<1x128xf32>
    %c0_5 = arith.constant 0 : index
    %c0_6 = arith.constant 0 : index
    %c0_7 = arith.constant 0 : index
    %10 = vector.load %arg3[%c0_5, %c0_6, %c0_7] : memref<1x8x128xf32, #tpu.memory_space<vmem>>, vector<1x1x128xf32>
    %11 = vector.shape_cast %10 : vector<1x1x128xf32> to vector<1x128xf32>
    %12 = vector.shape_cast %9 : vector<1x128xf32> to vector<1x1x128xf32>
    tpu.vector_store %arg3[%c0_5, %c0_6, %c0_7], %12 {strides = array<i32>} : memref<1x8x128xf32, #tpu.memory_space<vmem>>, vector<1x1x128xf32>,
    %c0_8 = arith.constant 0 : index
    %c1 = arith.constant 1 : index
    %c0_9 = arith.constant 0 : index
    %13 = vector.load %arg3[%c0_8, %c1, %c0_9] : memref<1x8x128xf32, #tpu.memory_space<vmem>>, vector<1x1x128xf32>
    %14 = vector.shape_cast %13 : vector<1x1x128xf32> to vector<1x128xf32>
    %cst_10 = arith.constant dense<0xFF800000> : vector<128xf32>
    %15 = vector.multi_reduction <maximumf>, %3, %cst_10 [0] : vector<16x128xf32> to vector<128xf32>
    %16 = vector.shape_cast %15 : vector<128xf32> to vector<1x128xf32>
    %17 = arith.maximumf %14, %16 : vector<1x128xf32>
    %c0_11 = arith.constant 0 : index
    %c1_12 = arith.constant 1 : index
    %c0_13 = arith.constant 0 : index
    %18 = vector.load %arg3[%c0_11, %c1_12, %c0_13] : memref<1x8x128xf32, #tpu.memory_space<vmem>>, vector<1x1x128xf32>
    %19 = vector.shape_cast %18 : vector<1x1x128xf32> to vector<1x128xf32>
    %20 = vector.shape_cast %17 : vector<1x128xf32> to vector<1x1x128xf32>
    tpu.vector_store %arg3[%c0_11, %c1_12, %c0_13], %20 {strides = array<i32>} : memref<1x8x128xf32, #tpu.memory_space<vmem>>, vector<1x1x128xf32>,
    %c0_14 = arith.constant 0 : index
    %c2 = arith.constant 2 : index
    %c0_15 = arith.constant 0 : index
    %21 = vector.load %arg3[%c0_14, %c2, %c0_15] : memref<1x8x128xf32, #tpu.memory_space<vmem>>, vector<1x1x128xf32>
    %22 = vector.shape_cast %21 : vector<1x1x128xf32> to vector<1x128xf32>
    %23 = arith.extui %4 : vector<16x128xi1> to vector<16x128xi32>
    %24 = arith.sitofp %23 : vector<16x128xi32> to vector<16x128xf32>
    %cst_16 = arith.constant dense<0xFF800000> : vector<128xf32>
    %25 = vector.multi_reduction <maximumf>, %24, %cst_16 [0] : vector<16x128xf32> to vector<128xf32>
    %26 = vector.shape_cast %25 : vector<128xf32> to vector<1x128xf32>
    %27 = arith.maximumf %22, %26 : vector<1x128xf32>
    %c0_17 = arith.constant 0 : index
    %c2_18 = arith.constant 2 : index
    %c0_19 = arith.constant 0 : index
    %28 = vector.load %arg3[%c0_17, %c2_18, %c0_19] : memref<1x8x128xf32, #tpu.memory_space<vmem>>, vector<1x1x128xf32>
    %29 = vector.shape_cast %28 : vector<1x1x128xf32> to vector<1x128xf32>
    %30 = vector.shape_cast %27 : vector<1x128xf32> to vector<1x1x128xf32>
    tpu.vector_store %arg3[%c0_17, %c2_18, %c0_19], %30 {strides = array<i32>} : memref<1x8x128xf32, #tpu.memory_space<vmem>>, vector<1x1x128xf32>,
    %c0_i32_20 = arith.constant 0 : i32
    %31 = arith.cmpi eq, %arg1, %c0_i32_20 : i32
    %32 = arith.extui %31 : i1 to i32
    %c0_i32_21 = arith.constant 0 : i32
    %33 = arith.cmpi ne, %32, %c0_i32_21 : i32
    scf.if %33 {
      %c0_22 = arith.constant 0 : index
      %c0_23 = arith.constant 0 : index
      %c0_24 = arith.constant 0 : index
      %34 = vector.load %arg3[%c0_22, %c0_23, %c0_24] : memref<1x8x128xf32, #tpu.memory_space<vmem>>, vector<1x1x128xf32>
      %35 = vector.shape_cast %34 : vector<1x1x128xf32> to vector<1x128xf32>
      %cst_25 = arith.constant dense<0x7F800000> : vector<1xf32>
      %36 = vector.multi_reduction <minimumf>, %35, %cst_25 [1] : vector<1x128xf32> to vector<1xf32>
      %37 = vector.shape_cast %36 : vector<1xf32> to vector<1x1xf32>
      %38 = vector.shape_cast %37 : vector<1x1xf32> to vector<1x1xf32>
      %39 = vector.broadcast %38 : vector<1x1xf32> to vector<1x128xf32>
      %c0_26 = arith.constant 0 : index
      %c3 = arith.constant 3 : index
      %c0_27 = arith.constant 0 : index
      %40 = vector.load %arg3[%c0_26, %c3, %c0_27] : memref<1x8x128xf32, #tpu.memory_space<vmem>>, vector<1x1x128xf32>
      %41 = vector.shape_cast %40 : vector<1x1x128xf32> to vector<1x128xf32>
      %42 = vector.shape_cast %39 : vector<1x128xf32> to vector<1x1x128xf32>
      tpu.vector_store %arg3[%c0_26, %c3, %c0_27], %42 {strides = array<i32>} : memref<1x8x128xf32, #tpu.memory_space<vmem>>, vector<1x1x128xf32>,
      %c0_28 = arith.constant 0 : index
      %c1_29 = arith.constant 1 : index
      %c0_30 = arith.constant 0 : index
      %43 = vector.load %arg3[%c0_28, %c1_29, %c0_30] : memref<1x8x128xf32, #tpu.memory_space<vmem>>, vector<1x1x128xf32>
      %44 = vector.shape_cast %43 : vector<1x1x128xf32> to vector<1x128xf32>
      %cst_31 = arith.constant dense<0xFF800000> : vector<1xf32>
      %45 = vector.multi_reduction <maximumf>, %44, %cst_31 [1] : vector<1x128xf32> to vector<1xf32>
      %46 = vector.shape_cast %45 : vector<1xf32> to vector<1x1xf32>
      %47 = vector.shape_cast %46 : vector<1x1xf32> to vector<1x1xf32>
      %48 = vector.broadcast %47 : vector<1x1xf32> to vector<1x128xf32>
      %c0_32 = arith.constant 0 : index
      %c4 = arith.constant 4 : index
      %c0_33 = arith.constant 0 : index
      %49 = vector.load %arg3[%c0_32, %c4, %c0_33] : memref<1x8x128xf32, #tpu.memory_space<vmem>>, vector<1x1x128xf32>
      %50 = vector.shape_cast %49 : vector<1x1x128xf32> to vector<1x128xf32>
      %51 = vector.shape_cast %48 : vector<1x128xf32> to vector<1x1x128xf32>
      tpu.vector_store %arg3[%c0_32, %c4, %c0_33], %51 {strides = array<i32>} : memref<1x8x128xf32, #tpu.memory_space<vmem>>, vector<1x1x128xf32>,
      %c0_34 = arith.constant 0 : index
      %c2_35 = arith.constant 2 : index
      %c0_36 = arith.constant 0 : index
      %52 = vector.load %arg3[%c0_34, %c2_35, %c0_36] : memref<1x8x128xf32, #tpu.memory_space<vmem>>, vector<1x1x128xf32>
      %53 = vector.shape_cast %52 : vector<1x1x128xf32> to vector<1x128xf32>
      %cst_37 = arith.constant dense<0xFF800000> : vector<1xf32>
      %54 = vector.multi_reduction <maximumf>, %53, %cst_37 [1] : vector<1x128xf32> to vector<1xf32>
      %55 = vector.shape_cast %54 : vector<1xf32> to vector<1x1xf32>
      %56 = vector.shape_cast %55 : vector<1x1xf32> to vector<1x1xf32>
      %57 = vector.broadcast %56 : vector<1x1xf32> to vector<1x128xf32>
      %c0_38 = arith.constant 0 : index
      %c5 = arith.constant 5 : index
      %c0_39 = arith.constant 0 : index
      %58 = vector.load %arg3[%c0_38, %c5, %c0_39] : memref<1x8x128xf32, #tpu.memory_space<vmem>>, vector<1x1x128xf32>
      %59 = vector.shape_cast %58 : vector<1x1x128xf32> to vector<1x128xf32>
      %60 = vector.shape_cast %57 : vector<1x128xf32> to vector<1x1x128xf32>
      tpu.vector_store %arg3[%c0_38, %c5, %c0_39], %60 {strides = array<i32>} : memref<1x8x128xf32, #tpu.memory_space<vmem>>, vector<1x1x128xf32>,
    } else {
    }
    return
  }
  func.func @transform_0(%arg0: i32, %arg1: i32) -> (i32, i32) {
    %c1_i32 = arith.constant 1 : i32
    %0 = arith.muli %arg0, %c1_i32 : i32
    %1 = arith.addi %0, %arg1 : i32
    %c0_i32 = arith.constant 0 : i32
    %c0_i32_0 = arith.constant 0 : i32
    return %1, %c0_i32 : i32, i32
  }
  func.func @transform_1(%arg0: i32, %arg1: i32) -> (i32, i32, i32) {
    %c0_i32 = arith.constant 0 : i32
    %c0_i32_0 = arith.constant 0 : i32
    %c0_i32_1 = arith.constant 0 : i32
    return %arg0, %c0_i32, %c0_i32_0 : i32, i32, i32
  }
}

module attributes {stable_mosaic.version = 11 : i64} {
  func.func @kernel(%arg0: i32, %arg1: i32, %arg2: memref<32x128xbf16, #tpu.memory_space<vmem>>, %arg3: memref<1x8x128xf32, #tpu.memory_space<vmem>>) attributes {dimension_semantics = [#tpu.dimension_semantics<parallel>, #tpu.dimension_semantics<arbitrary>], iteration_bounds = array<i64: 1, 1>, scalar_prefetch = 0 : i64, scratch_operands = 0 : i64, tpu.core_type = #tpu.core_type<tc>, window_params = [{transform_indices = @transform_0, window_bounds = array<i64: 32, 128>}, {transform_indices = @transform_1, window_bounds = array<i64: 1, 8, 128>}]} {
    %c0_i32 = arith.constant 0 : i32
    %0 = arith.cmpi eq, %arg1, %c0_i32 : i32
    %1 = arith.extui %0 : i1 to i32
    %c0_i32_0 = arith.constant 0 : i32
    %2 = arith.cmpi ne, %1, %c0_i32_0 : i32
    scf.if %2 {
      %cst_22 = arith.constant 0.000000e+00 : f32
      %35 = vector.broadcast %cst_22 : f32 to vector<8x128xf32>
      %c0_23 = arith.constant 0 : index
      %c0_24 = arith.constant 0 : index
      %c0_25 = arith.constant 0 : index
      %36 = vector.load %arg3[%c0_23, %c0_24, %c0_25] : memref<1x8x128xf32, #tpu.memory_space<vmem>>, vector<1x8x128xf32>
      %37 = vector.shape_cast %36 : vector<1x8x128xf32> to vector<8x128xf32>
      %38 = vector.shape_cast %35 : vector<8x128xf32> to vector<1x8x128xf32>
      tpu.vector_store %arg3[%c0_23, %c0_24, %c0_25], %38 {strides = array<i32>} : memref<1x8x128xf32, #tpu.memory_space<vmem>>, vector<1x8x128xf32>,
      %cst_26 = arith.constant 0x7F800000 : f32
      %39 = vector.broadcast %cst_26 : f32 to vector<1x128xf32>
      %c0_27 = arith.constant 0 : index
      %c0_28 = arith.constant 0 : index
      %c0_29 = arith.constant 0 : index
      %40 = vector.load %arg3[%c0_27, %c0_28, %c0_29] : memref<1x8x128xf32, #tpu.memory_space<vmem>>, vector<1x1x128xf32>
      %41 = vector.shape_cast %40 : vector<1x1x128xf32> to vector<1x128xf32>
      %42 = vector.shape_cast %39 : vector<1x128xf32> to vector<1x1x128xf32>
      tpu.vector_store %arg3[%c0_27, %c0_28, %c0_29], %42 {strides = array<i32>} : memref<1x8x128xf32, #tpu.memory_space<vmem>>, vector<1x1x128xf32>,
      %cst_30 = arith.constant 0xFF800000 : f32
      %43 = vector.broadcast %cst_30 : f32 to vector<1x128xf32>
      %c0_31 = arith.constant 0 : index
      %c1_32 = arith.constant 1 : index
      %c0_33 = arith.constant 0 : index
      %44 = vector.load %arg3[%c0_31, %c1_32, %c0_33] : memref<1x8x128xf32, #tpu.memory_space<vmem>>, vector<1x1x128xf32>
      %45 = vector.shape_cast %44 : vector<1x1x128xf32> to vector<1x128xf32>
      %46 = vector.shape_cast %43 : vector<1x128xf32> to vector<1x1x128xf32>
      tpu.vector_store %arg3[%c0_31, %c1_32, %c0_33], %46 {strides = array<i32>} : memref<1x8x128xf32, #tpu.memory_space<vmem>>, vector<1x1x128xf32>,
    } else {
    }
    %c0 = arith.constant 0 : index
    %c0_1 = arith.constant 0 : index
    %3 = vector.load %arg2[%c0, %c0_1] : memref<32x128xbf16, #tpu.memory_space<vmem>>, vector<32x128xbf16>
    %4 = arith.extf %3 : vector<32x128xbf16> to vector<32x128xf32>
    %5 = arith.cmpf one, %4, %4 : vector<32x128xf32>
    %c0_2 = arith.constant 0 : index
    %c0_3 = arith.constant 0 : index
    %c0_4 = arith.constant 0 : index
    %6 = vector.load %arg3[%c0_2, %c0_3, %c0_4] : memref<1x8x128xf32, #tpu.memory_space<vmem>>, vector<1x1x128xf32>
    %7 = vector.shape_cast %6 : vector<1x1x128xf32> to vector<1x128xf32>
    %cst = arith.constant dense<0x7F800000> : vector<128xf32>
    %8 = vector.multi_reduction <minimumf>, %4, %cst [0] : vector<32x128xf32> to vector<128xf32>
    %9 = vector.shape_cast %8 : vector<128xf32> to vector<1x128xf32>
    %10 = arith.minimumf %7, %9 : vector<1x128xf32>
    %c0_5 = arith.constant 0 : index
    %c0_6 = arith.constant 0 : index
    %c0_7 = arith.constant 0 : index
    %11 = vector.load %arg3[%c0_5, %c0_6, %c0_7] : memref<1x8x128xf32, #tpu.memory_space<vmem>>, vector<1x1x128xf32>
    %12 = vector.shape_cast %11 : vector<1x1x128xf32> to vector<1x128xf32>
    %13 = vector.shape_cast %10 : vector<1x128xf32> to vector<1x1x128xf32>
    tpu.vector_store %arg3[%c0_5, %c0_6, %c0_7], %13 {strides = array<i32>} : memref<1x8x128xf32, #tpu.memory_space<vmem>>, vector<1x1x128xf32>,
    %c0_8 = arith.constant 0 : index
    %c1 = arith.constant 1 : index
    %c0_9 = arith.constant 0 : index
    %14 = vector.load %arg3[%c0_8, %c1, %c0_9] : memref<1x8x128xf32, #tpu.memory_space<vmem>>, vector<1x1x128xf32>
    %15 = vector.shape_cast %14 : vector<1x1x128xf32> to vector<1x128xf32>
    %cst_10 = arith.constant dense<0xFF800000> : vector<128xf32>
    %16 = vector.multi_reduction <maximumf>, %4, %cst_10 [0] : vector<32x128xf32> to vector<128xf32>
    %17 = vector.shape_cast %16 : vector<128xf32> to vector<1x128xf32>
    %18 = arith.maximumf %15, %17 : vector<1x128xf32>
    %c0_11 = arith.constant 0 : index
    %c1_12 = arith.constant 1 : index
    %c0_13 = arith.constant 0 : index
    %19 = vector.load %arg3[%c0_11, %c1_12, %c0_13] : memref<1x8x128xf32, #tpu.memory_space<vmem>>, vector<1x1x128xf32>
    %20 = vector.shape_cast %19 : vector<1x1x128xf32> to vector<1x128xf32>
    %21 = vector.shape_cast %18 : vector<1x128xf32> to vector<1x1x128xf32>
    tpu.vector_store %arg3[%c0_11, %c1_12, %c0_13], %21 {strides = array<i32>} : memref<1x8x128xf32, #tpu.memory_space<vmem>>, vector<1x1x128xf32>,
    %c0_14 = arith.constant 0 : index
    %c2 = arith.constant 2 : index
    %c0_15 = arith.constant 0 : index
    %22 = vector.load %arg3[%c0_14, %c2, %c0_15] : memref<1x8x128xf32, #tpu.memory_space<vmem>>, vector<1x1x128xf32>
    %23 = vector.shape_cast %22 : vector<1x1x128xf32> to vector<1x128xf32>
    %24 = arith.extui %5 : vector<32x128xi1> to vector<32x128xi32>
    %25 = arith.sitofp %24 : vector<32x128xi32> to vector<32x128xf32>
    %cst_16 = arith.constant dense<0xFF800000> : vector<128xf32>
    %26 = vector.multi_reduction <maximumf>, %25, %cst_16 [0] : vector<32x128xf32> to vector<128xf32>
    %27 = vector.shape_cast %26 : vector<128xf32> to vector<1x128xf32>
    %28 = arith.maximumf %23, %27 : vector<1x128xf32>
    %c0_17 = arith.constant 0 : index
    %c2_18 = arith.constant 2 : index
    %c0_19 = arith.constant 0 : index
    %29 = vector.load %arg3[%c0_17, %c2_18, %c0_19] : memref<1x8x128xf32, #tpu.memory_space<vmem>>, vector<1x1x128xf32>
    %30 = vector.shape_cast %29 : vector<1x1x128xf32> to vector<1x128xf32>
    %31 = vector.shape_cast %28 : vector<1x128xf32> to vector<1x1x128xf32>
    tpu.vector_store %arg3[%c0_17, %c2_18, %c0_19], %31 {strides = array<i32>} : memref<1x8x128xf32, #tpu.memory_space<vmem>>, vector<1x1x128xf32>,
    %c0_i32_20 = arith.constant 0 : i32
    %32 = arith.cmpi eq, %arg1, %c0_i32_20 : i32
    %33 = arith.extui %32 : i1 to i32
    %c0_i32_21 = arith.constant 0 : i32
    %34 = arith.cmpi ne, %33, %c0_i32_21 : i32
    scf.if %34 {
      %c0_22 = arith.constant 0 : index
      %c0_23 = arith.constant 0 : index
      %c0_24 = arith.constant 0 : index
      %35 = vector.load %arg3[%c0_22, %c0_23, %c0_24] : memref<1x8x128xf32, #tpu.memory_space<vmem>>, vector<1x1x128xf32>
      %36 = vector.shape_cast %35 : vector<1x1x128xf32> to vector<1x128xf32>
      %cst_25 = arith.constant dense<0x7F800000> : vector<1xf32>
      %37 = vector.multi_reduction <minimumf>, %36, %cst_25 [1] : vector<1x128xf32> to vector<1xf32>
      %38 = vector.shape_cast %37 : vector<1xf32> to vector<1x1xf32>
      %39 = vector.shape_cast %38 : vector<1x1xf32> to vector<1x1xf32>
      %40 = vector.broadcast %39 : vector<1x1xf32> to vector<1x128xf32>
      %c0_26 = arith.constant 0 : index
      %c3 = arith.constant 3 : index
      %c0_27 = arith.constant 0 : index
      %41 = vector.load %arg3[%c0_26, %c3, %c0_27] : memref<1x8x128xf32, #tpu.memory_space<vmem>>, vector<1x1x128xf32>
      %42 = vector.shape_cast %41 : vector<1x1x128xf32> to vector<1x128xf32>
      %43 = vector.shape_cast %40 : vector<1x128xf32> to vector<1x1x128xf32>
      tpu.vector_store %arg3[%c0_26, %c3, %c0_27], %43 {strides = array<i32>} : memref<1x8x128xf32, #tpu.memory_space<vmem>>, vector<1x1x128xf32>,
      %c0_28 = arith.constant 0 : index
      %c1_29 = arith.constant 1 : index
      %c0_30 = arith.constant 0 : index
      %44 = vector.load %arg3[%c0_28, %c1_29, %c0_30] : memref<1x8x128xf32, #tpu.memory_space<vmem>>, vector<1x1x128xf32>
      %45 = vector.shape_cast %44 : vector<1x1x128xf32> to vector<1x128xf32>
      %cst_31 = arith.constant dense<0xFF800000> : vector<1xf32>
      %46 = vector.multi_reduction <maximumf>, %45, %cst_31 [1] : vector<1x128xf32> to vector<1xf32>
      %47 = vector.shape_cast %46 : vector<1xf32> to vector<1x1xf32>
      %48 = vector.shape_cast %47 : vector<1x1xf32> to vector<1x1xf32>
      %49 = vector.broadcast %48 : vector<1x1xf32> to vector<1x128xf32>
      %c0_32 = arith.constant 0 : index
      %c4 = arith.constant 4 : index
      %c0_33 = arith.constant 0 : index
      %50 = vector.load %arg3[%c0_32, %c4, %c0_33] : memref<1x8x128xf32, #tpu.memory_space<vmem>>, vector<1x1x128xf32>
      %51 = vector.shape_cast %50 : vector<1x1x128xf32> to vector<1x128xf32>
      %52 = vector.shape_cast %49 : vector<1x128xf32> to vector<1x1x128xf32>
      tpu.vector_store %arg3[%c0_32, %c4, %c0_33], %52 {strides = array<i32>} : memref<1x8x128xf32, #tpu.memory_space<vmem>>, vector<1x1x128xf32>,
      %c0_34 = arith.constant 0 : index
      %c2_35 = arith.constant 2 : index
      %c0_36 = arith.constant 0 : index
      %53 = vector.load %arg3[%c0_34, %c2_35, %c0_36] : memref<1x8x128xf32, #tpu.memory_space<vmem>>, vector<1x1x128xf32>
      %54 = vector.shape_cast %53 : vector<1x1x128xf32> to vector<1x128xf32>
      %cst_37 = arith.constant dense<0xFF800000> : vector<1xf32>
      %55 = vector.multi_reduction <maximumf>, %54, %cst_37 [1] : vector<1x128xf32> to vector<1xf32>
      %56 = vector.shape_cast %55 : vector<1xf32> to vector<1x1xf32>
      %57 = vector.shape_cast %56 : vector<1x1xf32> to vector<1x1xf32>
      %58 = vector.broadcast %57 : vector<1x1xf32> to vector<1x128xf32>
      %c0_38 = arith.constant 0 : index
      %c5 = arith.constant 5 : index
      %c0_39 = arith.constant 0 : index
      %59 = vector.load %arg3[%c0_38, %c5, %c0_39] : memref<1x8x128xf32, #tpu.memory_space<vmem>>, vector<1x1x128xf32>
      %60 = vector.shape_cast %59 : vector<1x1x128xf32> to vector<1x128xf32>
      %61 = vector.shape_cast %58 : vector<1x128xf32> to vector<1x1x128xf32>
      tpu.vector_store %arg3[%c0_38, %c5, %c0_39], %61 {strides = array<i32>} : memref<1x8x128xf32, #tpu.memory_space<vmem>>, vector<1x1x128xf32>,
    } else {
    }
    return
  }
  func.func @transform_0(%arg0: i32, %arg1: i32) -> (i32, i32) {
    %c1_i32 = arith.constant 1 : i32
    %0 = arith.muli %arg0, %c1_i32 : i32
    %1 = arith.addi %0, %arg1 : i32
    %c0_i32 = arith.constant 0 : i32
    %c0_i32_0 = arith.constant 0 : i32
    return %1, %c0_i32 : i32, i32
  }
  func.func @transform_1(%arg0: i32, %arg1: i32) -> (i32, i32, i32) {
    %c0_i32 = arith.constant 0 : i32
    %c0_i32_0 = arith.constant 0 : i32
    %c0_i32_1 = arith.constant 0 : i32
    return %arg0, %c0_i32, %c0_i32_0 : i32, i32, i32
  }
}

</mosaic_0001>

<bundles_post_ra>
// kernel: batched.2
= control target key start
LH: loop header
LB: loop body
LE: loop exit
PB: predicated region body
PF: predicated region fallthrough
CT: control target
= control target key end

     0   :  { %v109_v0 = vmov 0.0   ;;  %v110_v3 = vmov inf   ;;  %v111_v5 = vmov -inf   ;;  %vm79_vm2 = vcmask 1040384   ;;  %s173_s0 = inlined_call_operand.vmem [shape: f32[16,128], index: 0, kind: input, shape index: {}]   ;;  %s174_s1 = inlined_call_operand.vmem [shape: f32[1,8,128], index: 1, kind: output, shape index: {}]  }
   0x1   :  { %34 = vst [vmem:[%s174_s1] sm:$0xff] %v109_v0  ;;  %v37_v1 = vld [vmem:[%s173_s0] sm:$0xff]  ;;  %v38_v2 = vld [vmem:[%s173_s0 + $0x8] sm:$0xff] }
   0x2   :  { %35 = vst [vmem:[%s174_s1] sm:$0x1] %v110_v3  ;;  %v42_v4 = vmin.f32 %v37_v1, %v38_v2  ;;  %36 = vst [vmem:[%s174_s1 + $0x1] sm:$0x1] %v111_v5  ;;  %v52_v6 = vmax.f32 %v37_v1, %v38_v2  ;;  %vm39_vm0 = vcmp.ne.f32.partialorder %v37_v1, %v37_v1 }
   0x3   :  { %vm40_vm1 = vcmp.ne.f32.partialorder %v38_v2, %v38_v2  ;;  %v104_v7 = vsel %vm39_vm0, 1.0, %v109_v0 }
   0x4   :  { %v105_v8 = vsel %vm40_vm1, 1.0, %v109_v0  ;;  %v43_v9 = vrot.slane %v42_v4, 4  ;;  %v53_v10 = vrot.slane %v52_v6, 4 }
   0x5   :  { %v66_v11 = vmax.f32 %v104_v7, %v105_v8 }
   0x6   :  { %v44_v12 = vmin.f32 %v42_v4, %v43_v9  ;;  %v54_v13 = vmax.f32 %v52_v6, %v53_v10 }
   0x7   :  { %v67_v14 = vrot.slane %v66_v11, 4 }
   0x8   :  { %v45_v15 = vrot.slane %v44_v12, 2  ;;  %v55_v16 = vrot.slane %v54_v13, 2  ;;  %v61_v29 = vld [vmem:[%s174_s1 + $0x2] sm:$0x1] }
   0x9   :  { %v68_v17 = vmax.f32 %v66_v11, %v67_v14  ;;  %v41_v24 = vld [vmem:[%s174_s1] sm:$0x1]  ;;  %v51_v25 = vld [vmem:[%s174_s1 + $0x1] sm:$0x1] }
   0xa   :  { %v46_v18 = vmin.f32 %v44_v12, %v45_v15  ;;  %v56_v19 = vmax.f32 %v54_v13, %v55_v16 }
   0xb   :  { %v69_v20 = vrot.slane %v68_v17, 2 }
   0xc   :  { %v47_v21 = vrot.slane %v46_v18, 1  ;;  %v57_v22 = vrot.slane %v56_v19, 1 }
   0xd   :  { %v70_v23 = vmax.f32 %v68_v17, %v69_v20 }
   0xe   :  { %v48_v26 = vmin.f32 %v46_v18, %v47_v21  ;;  %v58_v27 = vmax.f32 %v56_v19, %v57_v22 }
   0xf   :  { %v71_v28 = vrot.slane %v70_v23, 1 }
  0x10   :  { %v49_v30 = vmin.f32 %v41_v24, %v48_v26  ;;  %v59_v31 = vmax.f32 %v51_v25, %v58_v27 }
  0x11   :  { %v72_v32 = vmax.f32 %v70_v23, %v71_v28 }
  0x12   :  { %50 = vst [vmem:[%s174_s1] sm:$0x1] %v49_v30  ;;  %60 = vst [vmem:[%s174_s1 + $0x1] sm:$0x1] %v59_v31 }
  0x13   :  { %v73_v33 = vmax.f32 %v61_v29, %v72_v32 }
  0x15   :  { %74 = vst [vmem:[%s174_s1 + $0x2] sm:$0x1] %v73_v33 }
  0x19   :  { %v78_v34 = vld [vmem:[%s174_s1] sm:$0x1]  ;;  %v84_v35 = vld [vmem:[%s174_s1 + $0x1] sm:$0x1] }
  0x1a   :  { %v80_v36 = vsel %vm79_vm2, %v78_v34, inf  ;;  %v85_v38 = vsel %vm79_vm2, %v84_v35, -inf }
  0x1b   :  { %81 = vmin.xlane.f32.xlu0 %v80_v36 }
  0x1c   :  { %v89_v37 = vld [vmem:[%s174_s1 + $0x2] sm:$0x1] }
  0x1d   :  { %v90_v39 = vsel %vm79_vm2, %v89_v37, -inf }
  0x1e   :  { %91 = vmax.xlane.f32.xlu1 %v90_v39 }
  0x1f   :  { %86 = vmax.xlane.f32.xlu0 %v85_v38 }
  0xa4   :  { %v82_v40 = vpop.xlane.xlu0 %81 }
  0xa5   :  { %83 = vst [vmem:[%s174_s1 + $0x3] sm:$0x1] %v82_v40 }
  0xa7   :  { %v92_v41 = vpop.xlane.xlu1 %91 }
  0xa8   :  { %93 = vst [vmem:[%s174_s1 + $0x5] sm:$0x1] %v92_v41  ;;  %v87_v42 = vpop.xlane.xlu0 %86 }
  0xa9   :  { %88 = vst [vmem:[%s174_s1 + $0x4] sm:$0x1] %v87_v42 }

// kernel: batched.3
= control target key start
LH: loop header
LB: loop body
LE: loop exit
PB: predicated region body
PF: predicated region fallthrough
CT: control target
= control target key end

     0   :  { %v138_v0 = vmov 0.0   ;;  %v139_v3 = vmov inf   ;;  %v140_v8 = vmov -inf   ;;  %vm97_vm4 = vcmask 1040384   ;;  %s202_s0 = inlined_call_operand.vmem [shape: bf16[32,128], index: 0, kind: input, shape index: {}]   ;;  %s203_s1 = inlined_call_operand.vmem [shape: f32[1,8,128], index: 1, kind: output, shape index: {}]  }
   0x1   :  { %34 = vst [vmem:[%s203_s1] sm:$0xff] %v138_v0  ;;  %v127_v1 = vld [vmem:[%s202_s0] sm:$0xff]   ;;  %v134_v2 = vld [vmem:[%s202_s0 + $0x8] sm:$0xff]  }
   0x2   :  { %35 = vst [vmem:[%s203_s1] sm:$0x1] %v139_v3  ;;  %v128_v4 = vunpack.c.l.bf16 %v127_v1  ;;  %v129_v5 = vunpack.c.h.bf16 %v127_v1  ;;  %v132_v6 = vunpack.c.l.bf16 %v134_v2  ;;  %v133_v7 = vunpack.c.h.bf16 %v134_v2  ;;  %36 = vst [vmem:[%s203_s1 + $0x1] sm:$0x1] %v140_v8 }
   0x4   :  { %v50_v9 = vmin.f32 %v128_v4, %v129_v5  ;;  %v51_v10 = vmin.f32 %v132_v6, %v133_v7  ;;  %v62_v11 = vmax.f32 %v128_v4, %v129_v5  ;;  %v63_v12 = vmax.f32 %v132_v6, %v133_v7 }
   0x5   :  { %vm45_vm0 = vcmp.ne.f32.partialorder %v128_v4, %v128_v4  ;;  %vm46_vm1 = vcmp.ne.f32.partialorder %v129_v5, %v129_v5  ;;  %vm47_vm2 = vcmp.ne.f32.partialorder %v132_v6, %v132_v6  ;;  %vm48_vm3 = vcmp.ne.f32.partialorder %v133_v7, %v133_v7 }
   0x6   :  { %v52_v13 = vmin.f32 %v50_v9, %v51_v10  ;;  %v64_v14 = vmax.f32 %v62_v11, %v63_v12  ;;  %v122_v15 = vsel %vm45_vm0, 1.0, %v138_v0  ;;  %v123_v16 = vsel %vm46_vm1, 1.0, %v138_v0 }
   0x7   :  { %v124_v17 = vsel %vm47_vm2, 1.0, %v138_v0  ;;  %v125_v18 = vsel %vm48_vm3, 1.0, %v138_v0  ;;  %v82_v19 = vmax.f32 %v122_v15, %v123_v16 }
   0x8   :  { %v53_v20 = vrot.slane %v52_v13, 4  ;;  %v65_v21 = vrot.slane %v64_v14, 4  ;;  %v83_v22 = vmax.f32 %v124_v17, %v125_v18  ;;  %v73_v43 = vld [vmem:[%s203_s1 + $0x2] sm:$0x1] }
   0x9   :  { %v49_v35 = vld [vmem:[%s203_s1] sm:$0x1]  ;;  %v61_v36 = vld [vmem:[%s203_s1 + $0x1] sm:$0x1] }
   0xa   :  { %v54_v23 = vmin.f32 %v52_v13, %v53_v20  ;;  %v66_v24 = vmax.f32 %v64_v14, %v65_v21  ;;  %v84_v25 = vmax.f32 %v82_v19, %v83_v22 }
   0xc   :  { %v55_v26 = vrot.slane %v54_v23, 2  ;;  %v67_v27 = vrot.slane %v66_v24, 2  ;;  %v85_v28 = vrot.slane %v84_v25, 4 }
   0xe   :  { %v56_v29 = vmin.f32 %v54_v23, %v55_v26  ;;  %v68_v30 = vmax.f32 %v66_v24, %v67_v27  ;;  %v86_v31 = vmax.f32 %v84_v25, %v85_v28 }
  0x10   :  { %v57_v32 = vrot.slane %v56_v29, 1  ;;  %v69_v33 = vrot.slane %v68_v30, 1  ;;  %v87_v34 = vrot.slane %v86_v31, 2 }
  0x12   :  { %v58_v37 = vmin.f32 %v56_v29, %v57_v32  ;;  %v70_v38 = vmax.f32 %v68_v30, %v69_v33  ;;  %v88_v39 = vmax.f32 %v86_v31, %v87_v34 }
  0x14   :  { %v59_v40 = vmin.f32 %v49_v35, %v58_v37  ;;  %v71_v41 = vmax.f32 %v61_v36, %v70_v38  ;;  %v89_v42 = vrot.slane %v88_v39, 1 }
  0x16   :  { %60 = vst [vmem:[%s203_s1] sm:$0x1] %v59_v40  ;;  %72 = vst [vmem:[%s203_s1 + $0x1] sm:$0x1] %v71_v41  ;;  %v90_v44 = vmax.f32 %v88_v39, %v89_v42 }
  0x18   :  { %v91_v45 = vmax.f32 %v73_v43, %v90_v44 }
  0x1a   :  { %92 = vst [vmem:[%s203_s1 + $0x2] sm:$0x1] %v91_v45 }
  0x1d   :  { %v96_v46 = vld [vmem:[%s203_s1] sm:$0x1]  ;;  %v102_v47 = vld [vmem:[%s203_s1 + $0x1] sm:$0x1] }
  0x1e   :  { %v98_v48 = vsel %vm97_vm4, %v96_v46, inf  ;;  %v103_v49 = vsel %vm97_vm4, %v102_v47, -inf }
  0x1f   :  { %99 = vmin.xlane.f32.xlu0 %v98_v48 }
  0x21   :  { %v107_v50 = vld [vmem:[%s203_s1 + $0x2] sm:$0x1] }
  0x22   :  { %v108_v51 = vsel %vm97_vm4, %v107_v50, -inf }
  0x23   :  { %104 = vmax.xlane.f32.xlu0 %v103_v49  ;;  %109 = vmax.xlane.f32.xlu1 %v108_v51 }
  0xa8   :  { %v100_v52 = vpop.xlane.xlu0 %99 }
  0xa9   :  { %101 = vst [vmem:[%s203_s1 + $0x3] sm:$0x1] %v100_v52 }
  0xac   :  { %v105_v53 = vpop.xlane.xlu0 %104  ;;  %v110_v54 = vpop.xlane.xlu1 %109 }
  0xad   :  { %106 = vst [vmem:[%s203_s1 + $0x4] sm:$0x1] %v105_v53  ;;  %111 = vst [vmem:[%s203_s1 + $0x5] sm:$0x1] %v110_v54 }

</bundles_post_ra>
